<compile_context>
chip_gen: v7x
topology: tpu7x:2x2x1
jax: 0.10.0
libtpu: 0.0.40
codegen_flags: <defaults>
</compile_context>

<pallas_src>
import functools

import jax
import jax.numpy as jnp
from jax.experimental import pallas as pl
from jax.experimental.pallas import tpu as pltpu


# Exact collapse of the 16 soft-weighted gates:
#   sum_k softmax(w)[k] * gate_k(A, B) == k0 + kA*A + kB*B + kAB*A*B
# Rows: [const, A, B, A*B]; columns: gates g0..g15.
_GATE_COEF = (
    (0, 0, 0, 0, 0, 0, 0, 0, 1, 1, 1, 1, 1, 1, 1, 1),      # const
    (0, 0, 1, 1, 0, 0, 1, 1, -1, -1, 0, 0, -1, -1, 0, 0),  # A
    (0, 0, 0, 0, 1, 1, 1, 1, -1, -1, -1, -1, 0, 0, 0, 0),  # B
    (0, 1, -1, 0, -1, 0, -2, -1, 1, 2, 0, 1, 0, 1, -1, 0), # A*B
)


def gate16_kernel(x_ref, conn_ref, coef_ref, o_ref):
    """One (TB, TG) output tile: fused A/B matmul + collapsed-gate epilogue."""
    tg = o_ref.shape[1]
    # (TB, N) @ (N, 2*TG): A columns occupy lanes [0, TG), B columns lanes [TG, 2*TG).
    y = jnp.dot(x_ref[...], conn_ref[...], preferred_element_type=jnp.float32)
    a = y[:, :tg]
    b = y[:, tg:]
    k0 = coef_ref[0:1, :]
    ka = coef_ref[1:2, :]
    kb = coef_ref[2:3, :]
    kab = coef_ref[3:4, :]
    # 3 broadcast multiplies + 3 adds on (TB, TG), all lane-dense.
    o_ref[...] = k0 + ka * a + (kb + kab * a) * b


def _round_up(x, m):
    return ((x + m - 1) // m) * m


def _tile_candidates(dim, granule, cap):
    """Pad `dim` only to `granule`; return (padded_dim, divisor tile candidates <= cap)."""
    padded = _round_up(dim, granule)
    limit = min(padded, cap)
    cands = [d for d in range(granule, limit + 1, granule) if padded % d == 0]
    # Large ragged dim with only small divisors: pad a little further and tile at the cap
    # (waste < cap, a small fraction of a large dim).
    if padded > cap and max(cands) < cap // 2:
        padded = _round_up(dim, cap)
        cands = [d for d in range(granule, cap + 1, granule) if padded % d == 0]
    return padded, cands


def _select_tiles(batch, n_gates, n_inputs, tb_max, tg_max, vmem_budget):
    pad_b, tb_cands = _tile_candidates(batch, 8, tb_max)
    pad_g, tg_cands = _tile_candidates(n_gates, 128, tg_max)

    def footprint(tb, tg):
        # Double-buffered x, conn, coef input blocks + output block, all f32.
        return 8 * (tb * n_inputs + n_inputs * 2 * tg + 4 * tg + tb * tg)

    best = None
    for tg in tg_cands:
        for tb in tb_cands:
            if footprint(tb, tg) > vmem_budget:
                continue
            key = (tb * tg, tg, tb)
            if best is None or key > best[0]:
                best = (key, tb, tg)
    if best is None:                      # degenerate (e.g. huge N): smallest legal tiles
        tb, tg = min(tb_cands), min(tg_cands)
    else:
        _, tb, tg = best
    return pad_b, pad_g, tb, tg, footprint(tb, tg)


@functools.partial(jax.jit, static_argnames=("tb_max", "tg_max"))
def learnable_gate16_forward(x, w, c, *, tb_max=1024, tg_max=2048):
    """x: (batch, N) f32; w: (16, G) f32; c: (N, G, 2) f32  ->  (batch, G) f32."""
    batch, n_inputs = x.shape
    n_gates = w.shape[1]

    vmem_budget = 16 * 1024 * 1024
    pad_b, pad_g, TB, TG, fp = _select_tiles(
        batch, n_gates, n_inputs, tb_max, tg_max, vmem_budget)
    n_bt = pad_b // TB
    n_gt = pad_g // TG

    # Parameter-sized prep, hoisted out of the kernel (fused by XLA).  For a fixed
    # module this could be precomputed once at init instead of per forward call.
    conn = jax.nn.softmax(c, axis=0)                                       # (N, G, 2)
    coef = jnp.array(_GATE_COEF, jnp.float32) @ jax.nn.softmax(w, axis=0)  # (4, G)

    if pad_g != n_gates:
        conn = jnp.pad(conn, ((0, 0), (0, pad_g - n_gates), (0, 0)))
        coef = jnp.pad(coef, ((0, 0), (0, pad_g - n_gates)))
    if pad_b != batch:
        x = jnp.pad(x, ((0, pad_b - batch), (0, 0)))

    # Repack so each gate tile's A columns then B columns sit contiguously on the lane
    # axis: (N, pad_g, 2) -> (N, n_gt * 2 * TG).  Pure column permutation, so per-column
    # softmax values and dot products are unchanged.
    conn = (conn.reshape(n_inputs, n_gt, TG, 2)
                .transpose(0, 1, 3, 2)
                .reshape(n_inputs, n_gt * 2 * TG))

    # Raise the scoped-VMEM limit just enough for the chosen tiles (v5e default is only
    # 16 MiB); keep comfortably below v7x's 64 MiB physical VMEM per core.
    vmem_limit = int(min(max(fp + fp // 2, 16 * 1024 * 1024), 48 * 1024 * 1024))

    out = pl.pallas_call(
        gate16_kernel,
        out_shape=jax.ShapeDtypeStruct((pad_b, pad_g), jnp.float32),
        grid_spec=pltpu.PrefetchScalarGridSpec(
            num_scalar_prefetch=0,
            grid=(n_gt, n_bt),            # gate tiles outer (conn/coef blocks reused), batch inner
            in_specs=[
                pl.BlockSpec((TB, n_inputs), lambda j, i: (i, 0)),
                pl.BlockSpec((n_inputs, 2 * TG), lambda j, i: (0, j)),
                pl.BlockSpec((4, TG), lambda j, i: (0, j)),
            ],
            out_specs=pl.BlockSpec((TB, TG), lambda j, i: (i, j)),
        ),
        compiler_params=pltpu.CompilerParams(
            dimension_semantics=("parallel", "parallel"),
            vmem_limit_bytes=vmem_limit,
        ),
    )(x, conn, coef)

    return out[:batch, :n_gates]


def reference_forward(x, w, c):
    """Pure-JAX reference mirroring the PyTorch forward exactly (binarized=False path)."""
    n_inputs, n_gates, _ = c.shape
    conn = jax.nn.softmax(c, axis=0).reshape(n_inputs, n_gates * 2)
    y = (x @ conn).reshape(x.shape[0], n_gates, 2)
    A = y[:, :, 0].T
    B = y[:, :, 1].T
    AB = A * B
    ones = jnp.ones_like(A)
    zeros = jnp.zeros_like(A)
    g2, g4, g7 = A - AB, B - AB, A + B - AB
    g6 = g7 - AB
    gates = jnp.stack([zeros, AB, g2, A, g4, B, g6, g7,
                       ones - g7, ones - g6, ones - B, ones - g4,
                       ones - A, ones - g2, ones - AB, ones], axis=0)
    weights = jax.nn.softmax(w, axis=0)
    out = (gates * weights[:, :, None]).sum(axis=0)
    return out.T


if __name__ == "__main__":
    # Case 1: small, module-consistent shapes (single tile path).
    batch, n_inputs, n_gates = 8, 32, 128
    kx, kw, kc = jax.random.split(jax.random.PRNGKey(0), 3)
    x = jax.random.normal(kx, (batch, n_inputs), dtype=jnp.float32)
    w = jax.random.normal(kw, (16, n_gates), dtype=jnp.float32)       # nn.init.normal_(std=1)
    c = jax.random.normal(kc, (n_inputs, n_gates, 2), dtype=jnp.float32)

    out = jax.block_until_ready(learnable_gate16_forward(x, w, c))
    ref = reference_forward(x, w, c)
    assert out.shape == (batch, n_gates)
    assert jnp.allclose(out, ref, atol=1e-5, rtol=1e-5), "case 1 mismatch vs reference"

    # Case 2: ragged batch / gate dims — divisor-based tiles, no tile-multiple padding.
    batch2, n_inputs2, n_gates2 = 272, 20, 640
    kx2, kw2, kc2 = jax.random.split(jax.random.PRNGKey(1), 3)
    x2 = jax.random.normal(kx2, (batch2, n_inputs2), dtype=jnp.float32)
    w2 = jax.random.normal(kw2, (16, n_gates2), dtype=jnp.float32)
    c2 = jax.random.normal(kc2, (n_inputs2, n_gates2, 2), dtype=jnp.float32)

    out2 = jax.block_until_ready(learnable_gate16_forward(x2, w2, c2))
    ref2 = reference_forward(x2, w2, c2)
    assert out2.shape == (batch2, n_gates2)
    assert jnp.allclose(out2, ref2, atol=1e-5, rtol=1e-5), "case 2 mismatch vs reference"

    print("KERNEL_OK")
</pallas_src>

<mosaic_0001>
module attributes {stable_mosaic.version = 11 : i64} {
  func.func @gate16_kernel(%arg0: i32, %arg1: i32, %arg2: memref<8x32xf32, #tpu.memory_space<vmem>>, %arg3: memref<32x256xf32, #tpu.memory_space<vmem>>, %arg4: memref<4x128xf32, #tpu.memory_space<vmem>>, %arg5: memref<8x128xf32, #tpu.memory_space<vmem>>) attributes {dimension_semantics = [#tpu.dimension_semantics<parallel>, #tpu.dimension_semantics<parallel>], iteration_bounds = array<i64: 1, 1>, scalar_prefetch = 0 : i64, scratch_operands = 0 : i64, tpu.core_type = #tpu.core_type<tc>, window_params = [{transform_indices = @transform_0, window_bounds = array<i64: 8, 32>}, {transform_indices = @transform_1, window_bounds = array<i64: 32, 256>}, {transform_indices = @transform_2, window_bounds = array<i64: 4, 128>}, {transform_indices = @transform_3, window_bounds = array<i64: 8, 128>}]} {
    %c0 = arith.constant 0 : index
    %c0_0 = arith.constant 0 : index
    %0 = vector.load %arg2[%c0, %c0_0] : memref<8x32xf32, #tpu.memory_space<vmem>>, vector<8x32xf32>
    %c0_1 = arith.constant 0 : index
    %c0_2 = arith.constant 0 : index
    %1 = vector.load %arg3[%c0_1, %c0_2] : memref<32x256xf32, #tpu.memory_space<vmem>>, vector<32x256xf32>
    %cst = arith.constant dense<0.000000e+00> : vector<8x256xf32>
    %2 = tpu.matmul %0, %1, %cst {dimension_numbers = #tpu.dot_dimension_numbers<[1], [0], [0], [1], [0, 0, 1, 1], [], []>} : vector<8x32xf32>, vector<32x256xf32>, vector<8x256xf32> -> vector<8x256xf32>
    %3 = vector.extract_strided_slice %2 {offsets = [0, 0], sizes = [8, 128], strides = [1, 1]} : vector<8x256xf32> to vector<8x128xf32>
    %4 = vector.extract_strided_slice %2 {offsets = [0, 128], sizes = [8, 128], strides = [1, 1]} : vector<8x256xf32> to vector<8x128xf32>
    %c0_3 = arith.constant 0 : index
    %c0_4 = arith.constant 0 : index
    %5 = vector.load %arg4[%c0_3, %c0_4] : memref<4x128xf32, #tpu.memory_space<vmem>>, vector<1x128xf32>
    %c1 = arith.constant 1 : index
    %c0_5 = arith.constant 0 : index
    %6 = vector.load %arg4[%c1, %c0_5] : memref<4x128xf32, #tpu.memory_space<vmem>>, vector<1x128xf32>
    %c2 = arith.constant 2 : index
    %c0_6 = arith.constant 0 : index
    %7 = vector.load %arg4[%c2, %c0_6] : memref<4x128xf32, #tpu.memory_space<vmem>>, vector<1x128xf32>
    %c3 = arith.constant 3 : index
    %c0_7 = arith.constant 0 : index
    %8 = vector.load %arg4[%c3, %c0_7] : memref<4x128xf32, #tpu.memory_space<vmem>>, vector<1x128xf32>
    %9 = vector.broadcast %6 : vector<1x128xf32> to vector<8x128xf32>
    %10 = arith.mulf %9, %3 : vector<8x128xf32>
    %11 = vector.broadcast %5 : vector<1x128xf32> to vector<8x128xf32>
    %12 = arith.addf %11, %10 : vector<8x128xf32>
    %13 = vector.broadcast %8 : vector<1x128xf32> to vector<8x128xf32>
    %14 = arith.mulf %13, %3 : vector<8x128xf32>
    %15 = vector.broadcast %7 : vector<1x128xf32> to vector<8x128xf32>
    %16 = arith.addf %15, %14 : vector<8x128xf32>
    %17 = arith.mulf %16, %4 : vector<8x128xf32>
    %18 = arith.addf %12, %17 : vector<8x128xf32>
    %c0_8 = arith.constant 0 : index
    %c0_9 = arith.constant 0 : index
    %19 = vector.load %arg5[%c0_8, %c0_9] : memref<8x128xf32, #tpu.memory_space<vmem>>, vector<8x128xf32>
    tpu.vector_store %arg5[%c0_8, %c0_9], %18 {strides = array<i32>} : memref<8x128xf32, #tpu.memory_space<vmem>>, vector<8x128xf32>,
    return
  }
  func.func @transform_0(%arg0: i32, %arg1: i32) -> (i32, i32) {
    %c0_i32 = arith.constant 0 : i32
    %c0_i32_0 = arith.constant 0 : i32
    return %arg1, %c0_i32 : i32, i32
  }
  func.func @transform_1(%arg0: i32, %arg1: i32) -> (i32, i32) {
    %c0_i32 = arith.constant 0 : i32
    %c0_i32_0 = arith.constant 0 : i32
    return %c0_i32, %arg0 : i32, i32
  }
  func.func @transform_2(%arg0: i32, %arg1: i32) -> (i32, i32) {
    %c0_i32 = arith.constant 0 : i32
    %c0_i32_0 = arith.constant 0 : i32
    return %c0_i32, %arg0 : i32, i32
  }
  func.func @transform_3(%arg0: i32, %arg1: i32) -> (i32, i32) {
    %c0_i32 = arith.constant 0 : i32
    return %arg1, %arg0 : i32, i32
  }
}

</mosaic_0001>

<bundles_post_ra>
// kernel: learnable_gate16_forward.1
= control target key start
LH: loop header
LB: loop body
LE: loop exit
PB: predicated region body
PF: predicated region fallthrough
CT: control target
= control target key end

     0   :  { %v179_v7 = vmov 0.0   ;;  %s252_s0 = inlined_call_operand.vmem [shape: f32[8,32], index: 0, kind: input, shape index: {}]   ;;  %s253_s1 = inlined_call_operand.vmem [shape: f32[32,256], index: 1, kind: input, shape index: {}]   ;;  %s254_s2 = inlined_call_operand.vmem [shape: f32[4,128], index: 2, kind: input, shape index: {}]   ;;  %s255_s3 = inlined_call_operand.hbm [shape: f32[8,128], index: 3, kind: output, shape index: {}]  }
   0x1   :  { %v17_v0 = vld [vmem:[%s253_s1 + $0x8] sm:$0xff]  ;;  %v19_v1 = vld [vmem:[%s253_s1 + $0x18] sm:$0xff]  ;;  %v16_v2 = vld [vmem:[%s253_s1] sm:$0xff]  ;;  %92 = vmatprep.mubr.f32.mxu0 %v179_v7 }
   0x2   :  { %v145_v3 = vpack.c.bf16 %v19_v1, %v17_v0  ;;  %v18_v4 = vld [vmem:[%s253_s1 + $0x10] sm:$0xff]  ;;  %v21_v5 = vld [vmem:[%s253_s1 + $0x28] sm:$0xff]  ;;  %v23_v6 = vld [vmem:[%s253_s1 + $0x38] sm:$0xff] }
   0x3   :  { %v147_v8 = vpack.c.bf16 %v18_v4, %v16_v2  ;;  %v149_v9 = vpack.c.bf16 %v23_v6, %v21_v5  ;;  %v20_v10 = vld [vmem:[%s253_s1 + $0x20] sm:$0xff]  ;;  %v22_v11 = vld [vmem:[%s253_s1 + $0x30] sm:$0xff] }
   0x4   :  { %146 = vmatprep.subr.bf16.mxu0 %v145_v3 }
   0x5   :  { %8 = vsyncpa [#allocation3], 0  ;;  %148 = vmatpush1.bf16.msra.mxu0 %v147_v8  ;;  %v151_v12 = vpack.c.bf16 %v22_v11, %v20_v10  ;;  %v15_v13 = vld [vmem:[%s252_s0] sm:$0xff]  ;;  %vm24_vm0 = vcmask 261120   ;;  %s180_s9 = smov [#allocation2]  }
   0x6   :  { %150 = vmatprep.subr.bf16.mxu0 %v149_v9  ;;  %v141_v14 = vld [vmem:[%s254_s2 + $0x1] ss:$0 sm:$0xff]  ;;  %v143_v15 = vld [vmem:[%s254_s2 + $0x3] ss:$0 sm:$0xff]  ;;  %v144_v17 = vld [vmem:[%s254_s2 + $0x2] ss:$0 sm:$0xff] }
   0x7   :  { %v142_v21 = vld [vmem:[%s254_s2] ss:$0 sm:$0xff]  ;;  %s132_s10 = sshll.u32 %s180_s9, 4  ;;  %s133_s10 = int_to_ptr.vmem [resolvable:$true] %s132_s10 }
   0x8   :  { %s155_s11 = scalar_lea.vmem %s133_s10, 128  ;;  %p160_p1 = scmp.lt.s32.totalorder %s133_s10, %s133_s10 }
   0x9   :  { %152 = vmatpush1.bf16.msra.mxu0 %v151_v12  ;;  %p156_p0 = scmp.ne.s32.totalorder %s133_s10, %s155_s11  ;;  %p161_p2 = scmp.lt.s32.totalorder %s155_s11, %s155_s11 }
   0xb   :  { %p162_p3 = por %p161_p2, %p160_p1 }
   0xc   :  { %140 = vmatmul.mubr.msk.f32.vlgmr.msra.gmra.mrb[0].mxu0 %vm24_vm0, %v15_v13 }
   0xd   :  { %p163_p4 = pnand %p162_p3, %p156_p0 }
  0xdf   :  { %v94_v16 = vpop.f32.mrb[0].mxu0 }
  0xe0   :  { %v107_v18 = vmul.f32 %v141_v14, %v94_v16  ;;  %v117_v19 = vmul.f32 %v143_v15, %v94_v16  ;;  %v96_v20 = vpop.f32.mrb[1].mxu0 }
  0xe2   :  { %v122_v22 = vadd.f32 %v144_v17, %v117_v19  ;;  %v112_v23 = vadd.f32 %v142_v21, %v107_v18 }
  0xe4   :  { %v123_v24 = vmul.f32 %v122_v22, %v96_v20 }
  0xe6   :  { %v124_v25 = vadd.f32 %v123_v24, %v112_v23 }
  0xe8   :  { %125 = vst [vmem:[#allocation2] sm:$0xff] %v124_v25 }
  0xe9   :  { %166 = shalt.err (!%p163_p4)
}
  0xea   :  { %s167_s14 = scalar_lea.hbm %s255_s3, 128 }
  0xeb   :  { %p168_p5 = scmp.ne.s32.totalorder %s255_s3, %s167_s14  ;;  %p171_p6 = scmp.lt.u32.totalorder %s167_s14, %s255_s3 }
  0xed   :  { %p173_p7 = pnand %p171_p6, %p168_p5 }
  0xef   :  { %176 = shalt.err (!%p173_p7)
}
  0xf0   :  { %135 = dma.vmem_to_hbm [thread:$0]  %s133_s10, 128, %s255_s3, [#allocation3]  }
  0xf1   :  { %177 = dma.done.wait [#allocation3], 128  }
  0xf2   :  { %178 = vsyncadd [#allocation3], 4294967168 }
  0xf3   :  { %139 = vsyncpa [#allocation3], 1 }

</bundles_post_ra>
